<compile_context>
chip_gen: v7x
topology: tpu7x:2x2x1
jax: 0.10.0
libtpu: 0.0.40
codegen_flags: <defaults>
</compile_context>

<pallas_src>
import functools

import jax
import jax.numpy as jnp
from jax.experimental import pallas as pl
from jax.experimental.pallas import tpu as pltpu


_LANE_CHOICES = (1024, 512, 256, 128)   # lane-dense last dims (multiples of 128)
_TARGET_TILE_ELEMS = 1 << 20            # ~1M elems/tile (4 MiB f32, 2 MiB bf16)
_MIN_PALLAS_BYTES = 1 << 20             # below ~1 MiB, let XLA fuse the lambda


def _lambda_kernel(f, compute_dtype, x_ref, o_ref):
    x = x_ref[...]
    if compute_dtype is not None:
        # v5e has no bf16 VPU/EUP; compute sub-32-bit floats in f32 explicitly.
        x = x.astype(compute_dtype)
    o_ref[...] = f(x).astype(o_ref.dtype)


class Lambda:
    """JAX/Pallas equivalent of the PyTorch Lambda(Module) wrapper."""

    def __init__(self, f, *, min_pallas_bytes=_MIN_PALLAS_BYTES):
        self.f = f
        self.min_pallas_bytes = min_pallas_bytes
        self._elementwise_cache = {}

    # ------------------------------------------------------------------ #
    # Elementwise-ness probe: f must commute with reshape and with block
    # splitting to be safe to run per-tile on a flattened 2D view.
    # Any failure (shape mismatch, exception, traced closure, numeric
    # disagreement) -> not elementwise -> plain f(x) fallback.
    # ------------------------------------------------------------------ #
    def _is_elementwise(self, dtype):
        key = jnp.dtype(dtype)
        cached = self._elementwise_cache.get(key)
        if cached is not None:
            return cached
        ok = False
        try:
            base = jnp.linspace(-2.0, 2.0, 2048).astype(key)
            a = self.f(base.reshape(16, 128))
            b = self.f(base.reshape(8, 256)).reshape(16, 128)
            top = self.f(base.reshape(16, 128)[:8])
            bot = self.f(base.reshape(16, 128)[8:])
            c = jnp.concatenate([top, bot], axis=0)
            ok = (
                a.shape == (16, 128)
                and bool(jnp.allclose(a, b, rtol=1e-3, atol=1e-3, equal_nan=True))
                and bool(jnp.allclose(a, c, rtol=1e-3, atol=1e-3, equal_nan=True))
            )
        except Exception:
            ok = False
        self._elementwise_cache[key] = ok
        return ok

    # ------------------------------------------------------------------ #
    # Pallas hot path: lane-dense flattened tiling for elementwise f.
    # ------------------------------------------------------------------ #
    def _pallas_elementwise(self, x, out_dtype):
        size = x.size

        lanes = None
        for cand in _LANE_CHOICES:
            if size % cand == 0:
                lanes = cand
                break
        pad = 0
        if lanes is None:
            lanes = 128
            pad = (-size) % lanes

        flat = x.reshape(-1)
        if pad:
            flat = jnp.pad(flat, (0, pad))
        rows = flat.size // lanes
        flat2d = flat.reshape(rows, lanes)

        # ~1M-element tiles, sublane-aligned (multiple of 8; also multiple of 16
        # which keeps packed bf16 rows aligned).
        tile_rows = max(16, (_TARGET_TILE_ELEMS // lanes) // 16 * 16)
        if rows <= tile_rows:
            tile_rows = rows          # single full-extent block (always legal)
        grid = (pl.cdiv(rows, tile_rows),)

        in_itemsize = jnp.dtype(x.dtype).itemsize
        out_itemsize = jnp.dtype(out_dtype).itemsize
        tile_bytes = tile_rows * lanes * max(in_itemsize, out_itemsize)
        # 2 input + 2 output double buffers + slack; keep well under v7x's 64 MiB.
        vmem_limit = int(min(56 * 1024 * 1024,
                             max(32 * 1024 * 1024, 6 * tile_bytes)))

        compute_dtype = None
        if jnp.dtype(x.dtype) in (jnp.dtype(jnp.bfloat16), jnp.dtype(jnp.float16)):
            compute_dtype = jnp.float32

        kernel = functools.partial(_lambda_kernel, self.f, compute_dtype)

        out2d = pl.pallas_call(
            kernel,
            out_shape=jax.ShapeDtypeStruct((rows, lanes), out_dtype),
            grid_spec=pltpu.PrefetchScalarGridSpec(
                num_scalar_prefetch=0,
                grid=grid,
                in_specs=[pl.BlockSpec((tile_rows, lanes), lambda i: (i, 0))],
                out_specs=pl.BlockSpec((tile_rows, lanes), lambda i: (i, 0)),
            ),
            compiler_params=pltpu.CompilerParams(
                dimension_semantics=("parallel",),   # megacore sharding on v7x
                vmem_limit_bytes=vmem_limit,
            ),
        )(flat2d)

        out = out2d.reshape(-1)
        if pad:
            out = out[:size]
        return out.reshape(x.shape)

    # ------------------------------------------------------------------ #
    def __call__(self, x):
        x = jnp.asarray(x)

        try:
            out_aval = jax.eval_shape(self.f, jax.ShapeDtypeStruct(x.shape, x.dtype))
            out_shape = out_aval.shape
            out_dtype = out_aval.dtype
        except Exception:
            return self.f(x)

        if out_shape != x.shape:
            # Shape-changing lambda (flatten/view/...): pure metadata, no compute
            # hot path to express in Pallas.
            # TODO(synk): a reshape-only lambda has no Pallas compute to express.
            return self.f(x)

        if x.size * x.dtype.itemsize < self.min_pallas_bytes:
            # Tiny input: kernel launch + DMA setup dominates; let XLA fuse it.
            return self.f(x)

        if not self._is_elementwise(x.dtype):
            # Shape-preserving but data-mixing f: tiling would be silently wrong.
            return self.f(x)

        return self._pallas_elementwise(x, out_dtype)


if __name__ == "__main__":
    key = jax.random.PRNGKey(0)
    k0, k1 = jax.random.split(key)

    # --- (a) small time-series input, Pallas path forced on -------------------
    x_small = jax.random.normal(k0, (2, 4, 16), dtype=jnp.float32)
    lam_forced = Lambda(lambda t: jnp.maximum(t, 0.0) * 2.0, min_pallas_bytes=0)
    y = jax.block_until_ready(lam_forced(x_small))
    y_ref = jnp.maximum(x_small, 0.0) * 2.0
    assert y.shape == y_ref.shape and y.dtype == y_ref.dtype
    assert jnp.allclose(y, y_ref, atol=1e-6, rtol=1e-6)

    # --- (b) same input, default threshold -> fast path (no kernel launch) ----
    lam_fast = Lambda(lambda t: jnp.maximum(t, 0.0) * 2.0)
    y2 = jax.block_until_ready(lam_fast(x_small))
    assert jnp.allclose(y2, y_ref, atol=1e-6, rtol=1e-6)

    # --- (c) shape-changing lambda (flatten/view) -> plain-JAX glue -----------
    lam_flat = Lambda(lambda t: t.reshape(t.shape[0], -1))
    z = jax.block_until_ready(lam_flat(x_small))
    assert z.shape == (2, 4 * 16)
    assert jnp.allclose(z, x_small.reshape(2, -1))

    # --- (d) larger input -> big lane-dense tiles through the Pallas kernel ---
    x_big = jax.random.normal(k1, (16, 32, 2048), dtype=jnp.float32)  # 4 MiB
    lam_big = Lambda(lambda t: jnp.tanh(t) * t)
    yb = jax.block_until_ready(lam_big(x_big))
    yb_ref = jnp.tanh(x_big) * x_big
    assert yb.shape == yb_ref.shape and yb.dtype == yb_ref.dtype
    assert jnp.allclose(yb, yb_ref, atol=1e-5, rtol=1e-5)

    # --- (e) shape-preserving but NON-elementwise lambda -> safe fallback -----
    lam_mix = Lambda(lambda t: jax.nn.softmax(t, axis=0), min_pallas_bytes=0)
    ym = jax.block_until_ready(lam_mix(x_small))
    ym_ref = jax.nn.softmax(x_small, axis=0)
    assert jnp.allclose(ym, ym_ref, atol=1e-6, rtol=1e-6)

    print("KERNEL_OK")
</pallas_src>

<mosaic_0001>
module attributes {stable_mosaic.version = 11 : i64} {
  func.func @_lambda_kernel(%arg0: i32, %arg1: memref<1x128xf32, #tpu.memory_space<vmem>>, %arg2: memref<1x128xf32, #tpu.memory_space<vmem>>) attributes {dimension_semantics = [#tpu.dimension_semantics<parallel>], iteration_bounds = array<i64: 1>, scalar_prefetch = 0 : i64, scratch_operands = 0 : i64, tpu.core_type = #tpu.core_type<tc>, window_params = [{transform_indices = @transform_0, window_bounds = array<i64: 1, 128>}, {transform_indices = @transform_1, window_bounds = array<i64: 1, 128>}]} {
    %c0 = arith.constant 0 : index
    %c0_0 = arith.constant 0 : index
    %0 = vector.load %arg1[%c0, %c0_0] : memref<1x128xf32, #tpu.memory_space<vmem>>, vector<1x128xf32>
    %cst = arith.constant 0.000000e+00 : f32
    %1 = vector.broadcast %cst : f32 to vector<1x128xf32>
    %2 = arith.maximumf %0, %1 : vector<1x128xf32>
    %cst_1 = arith.constant 2.000000e+00 : f32
    %3 = vector.broadcast %cst_1 : f32 to vector<1x128xf32>
    %4 = arith.mulf %2, %3 : vector<1x128xf32>
    %c0_2 = arith.constant 0 : index
    %c0_3 = arith.constant 0 : index
    %5 = vector.load %arg2[%c0_2, %c0_3] : memref<1x128xf32, #tpu.memory_space<vmem>>, vector<1x128xf32>
    tpu.vector_store %arg2[%c0_2, %c0_3], %4 {strides = array<i32>} : memref<1x128xf32, #tpu.memory_space<vmem>>, vector<1x128xf32>,
    return
  }
  func.func @transform_0(%arg0: i32) -> (i32, i32) {
    %c0_i32 = arith.constant 0 : i32
    %c0_i32_0 = arith.constant 0 : i32
    return %arg0, %c0_i32 : i32, i32
  }
  func.func @transform_1(%arg0: i32) -> (i32, i32) {
    %c0_i32 = arith.constant 0 : i32
    %c0_i32_0 = arith.constant 0 : i32
    return %arg0, %c0_i32 : i32, i32
  }
}

</mosaic_0001>

<bundles_post_ra>
// kernel: tpu_custom_call.1
= control target key start
LH: loop header
LB: loop body
LE: loop exit
PB: predicated region body
PF: predicated region fallthrough
CT: control target
= control target key end

     0   :  { %6 = vsyncpa [#allocation3], 0  ;;  %s126_s0 = inlined_call_operand.hbm [shape: f32[1,128], index: 0, kind: input, shape index: {}]   ;;  %s127_s1 = inlined_call_operand.hbm [shape: f32[1,128], index: 1, kind: output, shape index: {}]  }
   0x1   :  { %7 = vsyncpa [#allocation4], 0  ;;  %s90_s6 = smov [#allocation2]   ;;  %s42_s10 = scalar_lea.hbm %s126_s0, 16 }
   0x2   :  { %s14_s7 = sshll.u32 %s90_s6, 4  ;;  %p43_p0 = scmp.ne.s32.totalorder %s126_s0, %s42_s10  ;;  %s15_s7 = int_to_ptr.vmem [resolvable:$true] %s14_s7 }
   0x3   :  { %p46_p1 = scmp.lt.u32.totalorder %s42_s10, %s126_s0 }
   0x5   :  { %p48_p2 = pnand %p46_p1, %p43_p0 }
   0x7   :  { %51 = shalt.err (!%p48_p2)
}
   0x8   :  { %s52_s15 = scalar_lea.vmem %s15_s7, 16  ;;  %s56_s16 = scalar_lea.vmem %s15_s7, 32 }
   0x9   :  { %p53_p3 = scmp.ne.s32.totalorder %s15_s7, %s52_s15  ;;  %p57_p4 = scmp.lt.s32.totalorder %s15_s7, %s15_s7 }
   0xa   :  { %p58_p5 = scmp.lt.s32.totalorder %s56_s16, %s52_s15 }
   0xc   :  { %p59_p6 = por %p58_p5, %p57_p4 }
   0xe   :  { %p60_p7 = pnand %p59_p6, %p53_p3 }
  0x10   :  { %63 = shalt.err (!%p60_p7)
}
  0x11   :  { %17 = dma.hbm_to_vmem [thread:$0]  %s126_s0, 16, %s15_s7, [#allocation3]  }
  0x12   :  { %86 = dma.done.wait [#allocation3], 16  }
  0x13   :  { %87 = vsyncadd [#allocation3], 4294967280  ;;  %v21_v0 = vld [vmem:[#allocation2] sm:$0x1]  ;;  %s91_s19 = smov [#allocation5]  }
  0x14   :  { %s31_s20 = sshll.u32 %s91_s19, 4  ;;  %v22_v1 = vmax.f32 %v21_v0, 0.0  ;;  %s32_s20 = int_to_ptr.vmem [resolvable:$true] %s31_s20 }
  0x15   :  { %s64_s21 = scalar_lea.vmem %s32_s20, 16  ;;  %s68_s22 = scalar_lea.vmem %s32_s20, 32 }
  0x16   :  { %v23_v2 = vmul.f32 2.0, %v22_v1  ;;  %p65_p8 = scmp.ne.s32.totalorder %s32_s20, %s64_s21  ;;  %p69_p9 = scmp.lt.s32.totalorder %s32_s20, %s32_s20 }
  0x17   :  { %p70_p10 = scmp.lt.s32.totalorder %s68_s22, %s64_s21 }
  0x18   :  { %24 = vst [vmem:[#allocation5] sm:$0x1] %v23_v2 }
  0x19   :  { %p71_p11 = por %p70_p10, %p69_p9 }
  0x1b   :  { %p72_p12 = pnand %p71_p11, %p65_p8 }
  0x1d   :  { %75 = shalt.err (!%p72_p12)
}
  0x1e   :  { %s76_s0 = scalar_lea.hbm %s127_s1, 16 }
  0x1f   :  { %p77_p13 = scmp.ne.s32.totalorder %s127_s1, %s76_s0  ;;  %p80_p0 = scmp.lt.u32.totalorder %s76_s0, %s127_s1 }
  0x21   :  { %p82_p1 = pnand %p80_p0, %p77_p13 }
  0x23   :  { %85 = shalt.err (!%p82_p1)
}
  0x24   :  { %34 = dma.vmem_to_hbm [thread:$0]  %s32_s20, 16, %s127_s1, [#allocation4]  }
  0x25   :  { %88 = dma.done.wait [#allocation4], 16  }
  0x26   :  { %89 = vsyncadd [#allocation4], 4294967280 }
  0x27   :  { %38 = vsyncpa [#allocation3], 1 }
  0x28   :  { %39 = vsyncpa [#allocation4], 1 }

</bundles_post_ra>
